<compile_context>
chip_gen: v5e
topology: v5e:2x2
jax: 0.10.0
libtpu: 0.0.40
codegen_flags: <defaults>
</compile_context>

<pallas_src>
import functools

import jax
import jax.numpy as jnp
from jax.experimental import pallas as pl
from jax.experimental.pallas import tpu as pltpu

# ----------------------------- configuration --------------------------------
B = 2               # batch
C_IN = 3            # RGB
H = W = 32          # image size
DINO_PATCH = 8      # vit_patch_size (small synthetic value)
NH, HD = 4, 8       # dino heads / head dim
D_DINO = NH * HD    # dino embed dim = 32
CLIP_PATCH = 16     # clip backbone patch size
D_CLIP = 32         # clip feature dim
NUM_CLASSES = 8
EPS = 1e-12

DINO_MEAN = jnp.array([0.485, 0.456, 0.406], dtype=jnp.float32)
DINO_STD = jnp.array([0.229, 0.224, 0.225], dtype=jnp.float32)


# ----------------------------- Pallas kernels --------------------------------
def _dino_branch_kernel(x_ref, we_ref, be_ref, wk_ref, bk_ref, o_ref, *, eps):
    """Fused patch-embed -> k-projection -> row L2 normalize (one image)."""
    # activation cast to bf16 happens in-kernel (VPU slot), weights are already
    # bf16; both matmuls accumulate in f32 on the MXU.
    x = x_ref[...].astype(jnp.bfloat16)                              # (n, pd)
    tok = jnp.dot(x, we_ref[...], preferred_element_type=jnp.float32)
    tok = tok + be_ref[...]                                          # (n, d) f32
    k = jnp.dot(tok.astype(jnp.bfloat16), wk_ref[...],
                preferred_element_type=jnp.float32)
    k = k + bk_ref[...]
    # row-wise L2 normalize epilogue; rsqrt goes to the (idle) EUP slot.
    ss = jnp.sum(k * k, axis=-1, keepdims=True)
    o_ref[...] = k * jax.lax.rsqrt(ss + eps * eps)


def _clip_branch_kernel(x_ref, w_ref, b_ref, o_ref, *, eps):
    """Fused patch-embed -> row L2 normalize (one image)."""
    x = x_ref[...].astype(jnp.bfloat16)                              # (n, pd)
    y = jnp.dot(x, w_ref[...], preferred_element_type=jnp.float32)
    y = y + b_ref[...]
    ss = jnp.sum(y * y, axis=-1, keepdims=True)
    o_ref[...] = y * jax.lax.rsqrt(ss + eps * eps)


def dino_branch(patches, we, be, wk, bk, *, eps=EPS):
    """patches: (B, n, pd) f32 -> normalized k-features (B, n, d) f32."""
    b, n, pd = patches.shape
    d = we.shape[1]
    cost = pl.CostEstimate(
        flops=2 * b * n * (pd * d + d * d),
        transcendentals=b * n,
        bytes_accessed=(b * n * pd * 4 + pd * d * 2 + d * d * 2
                        + 2 * d * 4 + b * n * d * 4),
    )
    return pl.pallas_call(
        functools.partial(_dino_branch_kernel, eps=eps),
        out_shape=jax.ShapeDtypeStruct((b, n, d), jnp.float32),
        grid=(b,),
        in_specs=[
            pl.BlockSpec((None, n, pd), lambda i: (i, 0, 0)),   # one image
            pl.BlockSpec((pd, d), lambda i: (0, 0)),            # embed W (bf16)
            pl.BlockSpec((1, d), lambda i: (0, 0)),             # embed b (f32)
            pl.BlockSpec((d, d), lambda i: (0, 0)),             # k-proj W (bf16)
            pl.BlockSpec((1, d), lambda i: (0, 0)),             # k-proj b (f32)
        ],
        out_specs=pl.BlockSpec((None, n, d), lambda i: (i, 0, 0)),
        compiler_params=pltpu.CompilerParams(
            dimension_semantics=("parallel",)),                 # batch across TCs
        cost_estimate=cost,
    )(patches, we, be, wk, bk)


def clip_branch(patches, w, bias, *, eps=EPS):
    """patches: (B, n, pd) f32 -> normalized clip features (B, n, d) f32."""
    b, n, pd = patches.shape
    d = w.shape[1]
    cost = pl.CostEstimate(
        flops=2 * b * n * pd * d,
        transcendentals=b * n,
        bytes_accessed=(b * n * pd * 4 + pd * d * 2 + d * 4 + b * n * d * 4),
    )
    return pl.pallas_call(
        functools.partial(_clip_branch_kernel, eps=eps),
        out_shape=jax.ShapeDtypeStruct((b, n, d), jnp.float32),
        grid=(b,),
        in_specs=[
            pl.BlockSpec((None, n, pd), lambda i: (i, 0, 0)),
            pl.BlockSpec((pd, d), lambda i: (0, 0)),
            pl.BlockSpec((1, d), lambda i: (0, 0)),
        ],
        out_specs=pl.BlockSpec((None, n, d), lambda i: (i, 0, 0)),
        compiler_params=pltpu.CompilerParams(
            dimension_semantics=("parallel",)),
        cost_estimate=cost,
    )(patches, w, bias)


# ----------------------------- plain-JAX glue --------------------------------
def make_input_divisible(x, patch_size):
    _, _, h0, w0 = x.shape
    pad_h = (patch_size - h0 % patch_size) % patch_size
    pad_w = (patch_size - w0 % patch_size) % patch_size
    if pad_h == 0 and pad_w == 0:
        return x
    return jnp.pad(x, ((0, 0), (0, 0), (0, pad_h), (0, pad_w)))


def patchify(x, p):
    """NCHW -> (B, N, C*p*p) with row-major token order over (h, w)."""
    # TODO(synk): at real LPOSS resolutions this 6-D transpose is a full-image
    # HBM relayout; a gather-style BlockSpec pulling (C,p,p) patches straight
    # from NCHW would remove it.  Not worth it at 32x32.
    b, c, h, w = x.shape
    hp, wp = h // p, w // p
    x = x.reshape(b, c, hp, p, wp, p)
    x = x.transpose(0, 2, 4, 1, 3, 5)          # (B, hp, wp, C, p, p)
    return x.reshape(b, hp * wp, c * p * p), (hp, wp)


def init_params(key):
    ks = jax.random.split(key, 8)
    s = 0.02
    return {
        "dino_embed_w": s * jax.random.normal(ks[0], (C_IN * DINO_PATCH * DINO_PATCH, D_DINO), jnp.float32),
        "dino_embed_b": s * jax.random.normal(ks[1], (D_DINO,), jnp.float32),
        "dino_cls": s * jax.random.normal(ks[2], (1, 1, D_DINO), jnp.float32),
        "dino_qkv_w": s * jax.random.normal(ks[3], (D_DINO, 3 * D_DINO), jnp.float32),
        "dino_qkv_b": s * jax.random.normal(ks[4], (3 * D_DINO,), jnp.float32),
        "clip_embed_w": s * jax.random.normal(ks[5], (C_IN * CLIP_PATCH * CLIP_PATCH, D_CLIP), jnp.float32),
        "clip_embed_b": s * jax.random.normal(ks[6], (D_CLIP,), jnp.float32),
        "class_embeddings": jax.random.normal(ks[7], (NUM_CLASSES, D_CLIP), jnp.float32),
    }


def prepare_params(params):
    """One-time, outside-jit parameter preprocessing.

    * Folds the DINO (x - mean)/std image normalization into the patch-embed
      weights/bias (exact: the reference zero-pads BEFORE normalizing, and the
      fold reproduces the -mean/std value on padded pixels through the bias).
    * Slices only the 'k' third of the qkv projection (the hook + 'k' extract).
    * Casts matmul weights to bf16 once; keeps biases in f32 row vectors.
    * The cls token is dropped: its k-feature is discarded by the reference
      (`feats[:, 1:, ...]`) and the single linear layers are row-wise, so the
      patch-token features are unchanged.
    """
    scale = jnp.repeat(1.0 / DINO_STD, DINO_PATCH * DINO_PATCH)          # (C*p*p,)
    shift = jnp.repeat(DINO_MEAN / DINO_STD, DINO_PATCH * DINO_PATCH)    # (C*p*p,)
    w_embed = params["dino_embed_w"] * scale[:, None]
    b_embed = params["dino_embed_b"] - shift @ params["dino_embed_w"]
    k_w = params["dino_qkv_w"][:, D_DINO:2 * D_DINO]
    k_b = params["dino_qkv_b"][D_DINO:2 * D_DINO]
    return {
        "dino_embed_w": w_embed.astype(jnp.bfloat16),
        "dino_embed_b": b_embed.reshape(1, D_DINO).astype(jnp.float32),
        "dino_k_w": k_w.astype(jnp.bfloat16),
        "dino_k_b": k_b.reshape(1, D_DINO).astype(jnp.float32),
        "clip_embed_w": params["clip_embed_w"].astype(jnp.bfloat16),
        "clip_embed_b": params["clip_embed_b"].reshape(1, D_CLIP).astype(jnp.float32),
        "class_embeddings": params["class_embeddings"].astype(jnp.float32),
    }


@jax.jit
def lposs_forward(x, p):
    b = x.shape[0]

    # ---------------- DINO branch (get_dino_features) ----------------
    xd = make_input_divisible(x, DINO_PATCH)
    patches, (h_dino, w_dino) = patchify(xd, DINO_PATCH)        # (B, N, C*p*p)
    # fused: patch-embed -> k-projection -> L2 normalize, one pallas_call,
    # tok never leaves VMEM/vregs.  (The redundant second F.normalize in the
    # reference forward() is a mathematical no-op and is not repeated.)
    dino_feats = dino_branch(patches, p["dino_embed_w"], p["dino_embed_b"],
                             p["dino_k_w"], p["dino_k_b"])
    dino_feats = dino_feats.reshape(b, h_dino, w_dino, D_DINO)

    # ---------------- CLIP branch (get_clip_features) ----------------
    xc = make_input_divisible(x, CLIP_PATCH)
    cpatches, (h_clip, w_clip) = patchify(xc, CLIP_PATCH)
    clip_feats = clip_branch(cpatches, p["clip_embed_w"], p["clip_embed_b"])
    clip_feats = clip_feats.reshape(b, h_clip, w_clip, D_CLIP)
    # TODO(synk): clip_preds (maskclip segmentation map) is produced by the real
    # backbone but unused in the module's return value; skipped here.

    # ---------------- classifier embeddings ----------------
    # tiny (NUM_CLASSES, D) table: plain jnp, XLA fuses it for free.
    ce = p["class_embeddings"]
    clf = ce * jax.lax.rsqrt(jnp.sum(ce * ce, axis=-1, keepdims=True) + EPS * EPS)

    return dino_feats, clip_feats, clf


if __name__ == "__main__":
    key = jax.random.PRNGKey(0)
    x = jax.random.uniform(key, (B, C_IN, H, W), dtype=jnp.float32)
    params = prepare_params(init_params(jax.random.PRNGKey(42)))   # one-time, outside jit

    dino_feats, clip_feats, clf = jax.block_until_ready(lposs_forward(x, params))

    assert dino_feats.shape == (B, H // DINO_PATCH, W // DINO_PATCH, D_DINO)
    assert clip_feats.shape == (B, H // CLIP_PATCH, W // CLIP_PATCH, D_CLIP)
    assert clf.shape == (NUM_CLASSES, D_CLIP)
    assert bool(jnp.all(jnp.isfinite(dino_feats)))
    assert bool(jnp.all(jnp.isfinite(clip_feats)))
    assert bool(jnp.all(jnp.isfinite(clf)))
    # normalized rows should have unit L2 norm
    assert bool(jnp.allclose(jnp.linalg.norm(dino_feats, axis=-1), 1.0, atol=1e-2))
    assert bool(jnp.allclose(jnp.linalg.norm(clip_feats, axis=-1), 1.0, atol=1e-2))
    print("KERNEL_OK")
</pallas_src>

<mosaic_0001>
module attributes {stable_mosaic.version = 11 : i64} {
  func.func @_dino_branch_kernel(%arg0: i32, %arg1: memref<1x16x192xf32, #tpu.memory_space<vmem>>, %arg2: memref<192x32xbf16, #tpu.memory_space<vmem>>, %arg3: memref<1x32xf32, #tpu.memory_space<vmem>>, %arg4: memref<32x32xbf16, #tpu.memory_space<vmem>>, %arg5: memref<1x32xf32, #tpu.memory_space<vmem>>, %arg6: memref<1x16x32xf32, #tpu.memory_space<vmem>>) attributes {dimension_semantics = [#tpu.dimension_semantics<parallel>], iteration_bounds = array<i64: 2>, scalar_prefetch = 0 : i64, scratch_operands = 0 : i64, tpu.core_type = #tpu.core_type<tc>, window_params = [{transform_indices = @transform_0, window_bounds = array<i64: 1, 16, 192>}, {pipeline_mode = #tpu.pipeline_mode<synchronous>, transform_indices = @transform_1, window_bounds = array<i64: 192, 32>}, {pipeline_mode = #tpu.pipeline_mode<synchronous>, transform_indices = @transform_2, window_bounds = array<i64: 1, 32>}, {pipeline_mode = #tpu.pipeline_mode<synchronous>, transform_indices = @transform_3, window_bounds = array<i64: 32, 32>}, {pipeline_mode = #tpu.pipeline_mode<synchronous>, transform_indices = @transform_4, window_bounds = array<i64: 1, 32>}, {transform_indices = @transform_5, window_bounds = array<i64: 1, 16, 32>}]} {
    %c0 = arith.constant 0 : index
    %c0_0 = arith.constant 0 : index
    %c0_1 = arith.constant 0 : index
    %0 = vector.load %arg1[%c0, %c0_0, %c0_1] : memref<1x16x192xf32, #tpu.memory_space<vmem>>, vector<1x16x192xf32>
    %1 = vector.shape_cast %0 : vector<1x16x192xf32> to vector<16x192xf32>
    %2 = arith.truncf %1 : vector<16x192xf32> to vector<16x192xbf16>
    %c0_2 = arith.constant 0 : index
    %c0_3 = arith.constant 0 : index
    %3 = vector.load %arg2[%c0_2, %c0_3] : memref<192x32xbf16, #tpu.memory_space<vmem>>, vector<192x32xbf16>
    %cst = arith.constant dense<0.000000e+00> : vector<16x32xf32>
    %4 = tpu.matmul %2, %3, %cst {dimension_numbers = #tpu.dot_dimension_numbers<[1], [0], [0], [1], [0, 0, 1, 1], [], []>} : vector<16x192xbf16>, vector<192x32xbf16>, vector<16x32xf32> -> vector<16x32xf32>
    %c0_4 = arith.constant 0 : index
    %c0_5 = arith.constant 0 : index
    %5 = vector.load %arg3[%c0_4, %c0_5] : memref<1x32xf32, #tpu.memory_space<vmem>>, vector<1x32xf32>
    %6 = vector.broadcast %5 : vector<1x32xf32> to vector<16x32xf32>
    %7 = arith.addf %4, %6 : vector<16x32xf32>
    %8 = arith.truncf %7 : vector<16x32xf32> to vector<16x32xbf16>
    %c0_6 = arith.constant 0 : index
    %c0_7 = arith.constant 0 : index
    %9 = vector.load %arg4[%c0_6, %c0_7] : memref<32x32xbf16, #tpu.memory_space<vmem>>, vector<32x32xbf16>
    %cst_8 = arith.constant dense<0.000000e+00> : vector<16x32xf32>
    %10 = tpu.matmul %8, %9, %cst_8 {dimension_numbers = #tpu.dot_dimension_numbers<[1], [0], [0], [1], [0, 0, 1, 1], [], []>} : vector<16x32xbf16>, vector<32x32xbf16>, vector<16x32xf32> -> vector<16x32xf32>
    %c0_9 = arith.constant 0 : index
    %c0_10 = arith.constant 0 : index
    %11 = vector.load %arg5[%c0_9, %c0_10] : memref<1x32xf32, #tpu.memory_space<vmem>>, vector<1x32xf32>
    %12 = vector.broadcast %11 : vector<1x32xf32> to vector<16x32xf32>
    %13 = arith.addf %10, %12 : vector<16x32xf32>
    %14 = arith.mulf %13, %13 : vector<16x32xf32>
    %cst_11 = arith.constant dense<0.000000e+00> : vector<16xf32>
    %15 = vector.multi_reduction <add>, %14, %cst_11 [1] : vector<16x32xf32> to vector<16xf32>
    %16 = vector.shape_cast %15 : vector<16xf32> to vector<16x1xf32>
    %cst_12 = arith.constant 1.000000e-24 : f32
    %17 = vector.broadcast %cst_12 : f32 to vector<16x1xf32>
    %18 = arith.addf %16, %17 : vector<16x1xf32>
    %19 = math.rsqrt %18 : vector<16x1xf32>
    %20 = vector.broadcast %19 : vector<16x1xf32> to vector<16x32xf32>
    %21 = arith.mulf %13, %20 : vector<16x32xf32>
    %c0_13 = arith.constant 0 : index
    %c0_14 = arith.constant 0 : index
    %c0_15 = arith.constant 0 : index
    %22 = vector.load %arg6[%c0_13, %c0_14, %c0_15] : memref<1x16x32xf32, #tpu.memory_space<vmem>>, vector<1x16x32xf32>
    %23 = vector.shape_cast %22 : vector<1x16x32xf32> to vector<16x32xf32>
    %24 = vector.shape_cast %21 : vector<16x32xf32> to vector<1x16x32xf32>
    tpu.vector_store %arg6[%c0_13, %c0_14, %c0_15], %24 {strides = array<i32>} : memref<1x16x32xf32, #tpu.memory_space<vmem>>, vector<1x16x32xf32>,
    return
  }
  func.func @transform_0(%arg0: i32) -> (i32, i32, i32) {
    %c0_i32 = arith.constant 0 : i32
    %c0_i32_0 = arith.constant 0 : i32
    %c0_i32_1 = arith.constant 0 : i32
    return %arg0, %c0_i32, %c0_i32_0 : i32, i32, i32
  }
  func.func @transform_1(%arg0: i32) -> (i32, i32) {
    %c0_i32 = arith.constant 0 : i32
    %c0_i32_0 = arith.constant 0 : i32
    %c0_i32_1 = arith.constant 0 : i32
    return %c0_i32, %c0_i32_0 : i32, i32
  }
  func.func @transform_2(%arg0: i32) -> (i32, i32) {
    %c0_i32 = arith.constant 0 : i32
    %c0_i32_0 = arith.constant 0 : i32
    %c0_i32_1 = arith.constant 0 : i32
    return %c0_i32, %c0_i32_0 : i32, i32
  }
  func.func @transform_3(%arg0: i32) -> (i32, i32) {
    %c0_i32 = arith.constant 0 : i32
    %c0_i32_0 = arith.constant 0 : i32
    %c0_i32_1 = arith.constant 0 : i32
    return %c0_i32, %c0_i32_0 : i32, i32
  }
  func.func @transform_4(%arg0: i32) -> (i32, i32) {
    %c0_i32 = arith.constant 0 : i32
    %c0_i32_0 = arith.constant 0 : i32
    %c0_i32_1 = arith.constant 0 : i32
    return %c0_i32, %c0_i32_0 : i32, i32
  }
  func.func @transform_5(%arg0: i32) -> (i32, i32, i32) {
    %c0_i32 = arith.constant 0 : i32
    %c0_i32_0 = arith.constant 0 : i32
    %c0_i32_1 = arith.constant 0 : i32
    return %arg0, %c0_i32, %c0_i32_0 : i32, i32, i32
  }
}

module attributes {stable_mosaic.version = 11 : i64} {
  func.func @_clip_branch_kernel(%arg0: i32, %arg1: memref<1x4x768xf32, #tpu.memory_space<vmem>>, %arg2: memref<768x32xbf16, #tpu.memory_space<vmem>>, %arg3: memref<1x32xf32, #tpu.memory_space<vmem>>, %arg4: memref<1x4x32xf32, #tpu.memory_space<vmem>>) attributes {dimension_semantics = [#tpu.dimension_semantics<parallel>], iteration_bounds = array<i64: 2>, scalar_prefetch = 0 : i64, scratch_operands = 0 : i64, tpu.core_type = #tpu.core_type<tc>, window_params = [{transform_indices = @transform_0, window_bounds = array<i64: 1, 4, 768>}, {pipeline_mode = #tpu.pipeline_mode<synchronous>, transform_indices = @transform_1, window_bounds = array<i64: 768, 32>}, {pipeline_mode = #tpu.pipeline_mode<synchronous>, transform_indices = @transform_2, window_bounds = array<i64: 1, 32>}, {transform_indices = @transform_3, window_bounds = array<i64: 1, 4, 32>}]} {
    %c0 = arith.constant 0 : index
    %c0_0 = arith.constant 0 : index
    %c0_1 = arith.constant 0 : index
    %0 = vector.load %arg1[%c0, %c0_0, %c0_1] : memref<1x4x768xf32, #tpu.memory_space<vmem>>, vector<1x4x768xf32>
    %1 = vector.shape_cast %0 : vector<1x4x768xf32> to vector<4x768xf32>
    %2 = arith.truncf %1 : vector<4x768xf32> to vector<4x768xbf16>
    %c0_2 = arith.constant 0 : index
    %c0_3 = arith.constant 0 : index
    %3 = vector.load %arg2[%c0_2, %c0_3] : memref<768x32xbf16, #tpu.memory_space<vmem>>, vector<768x32xbf16>
    %cst = arith.constant dense<0.000000e+00> : vector<4x32xf32>
    %4 = tpu.matmul %2, %3, %cst {dimension_numbers = #tpu.dot_dimension_numbers<[1], [0], [0], [1], [0, 0, 1, 1], [], []>} : vector<4x768xbf16>, vector<768x32xbf16>, vector<4x32xf32> -> vector<4x32xf32>
    %c0_4 = arith.constant 0 : index
    %c0_5 = arith.constant 0 : index
    %5 = vector.load %arg3[%c0_4, %c0_5] : memref<1x32xf32, #tpu.memory_space<vmem>>, vector<1x32xf32>
    %6 = vector.broadcast %5 : vector<1x32xf32> to vector<4x32xf32>
    %7 = arith.addf %4, %6 : vector<4x32xf32>
    %8 = arith.mulf %7, %7 : vector<4x32xf32>
    %cst_6 = arith.constant dense<0.000000e+00> : vector<4xf32>
    %9 = vector.multi_reduction <add>, %8, %cst_6 [1] : vector<4x32xf32> to vector<4xf32>
    %10 = vector.shape_cast %9 : vector<4xf32> to vector<4x1xf32>
    %cst_7 = arith.constant 1.000000e-24 : f32
    %11 = vector.broadcast %cst_7 : f32 to vector<4x1xf32>
    %12 = arith.addf %10, %11 : vector<4x1xf32>
    %13 = math.rsqrt %12 : vector<4x1xf32>
    %14 = vector.broadcast %13 : vector<4x1xf32> to vector<4x32xf32>
    %15 = arith.mulf %7, %14 : vector<4x32xf32>
    %c0_8 = arith.constant 0 : index
    %c0_9 = arith.constant 0 : index
    %c0_10 = arith.constant 0 : index
    %16 = vector.load %arg4[%c0_8, %c0_9, %c0_10] : memref<1x4x32xf32, #tpu.memory_space<vmem>>, vector<1x4x32xf32>
    %17 = vector.shape_cast %16 : vector<1x4x32xf32> to vector<4x32xf32>
    %18 = vector.shape_cast %15 : vector<4x32xf32> to vector<1x4x32xf32>
    tpu.vector_store %arg4[%c0_8, %c0_9, %c0_10], %18 {strides = array<i32>} : memref<1x4x32xf32, #tpu.memory_space<vmem>>, vector<1x4x32xf32>,
    return
  }
  func.func @transform_0(%arg0: i32) -> (i32, i32, i32) {
    %c0_i32 = arith.constant 0 : i32
    %c0_i32_0 = arith.constant 0 : i32
    %c0_i32_1 = arith.constant 0 : i32
    return %arg0, %c0_i32, %c0_i32_0 : i32, i32, i32
  }
  func.func @transform_1(%arg0: i32) -> (i32, i32) {
    %c0_i32 = arith.constant 0 : i32
    %c0_i32_0 = arith.constant 0 : i32
    %c0_i32_1 = arith.constant 0 : i32
    return %c0_i32, %c0_i32_0 : i32, i32
  }
  func.func @transform_2(%arg0: i32) -> (i32, i32) {
    %c0_i32 = arith.constant 0 : i32
    %c0_i32_0 = arith.constant 0 : i32
    %c0_i32_1 = arith.constant 0 : i32
    return %c0_i32, %c0_i32_0 : i32, i32
  }
  func.func @transform_3(%arg0: i32) -> (i32, i32, i32) {
    %c0_i32 = arith.constant 0 : i32
    %c0_i32_0 = arith.constant 0 : i32
    %c0_i32_1 = arith.constant 0 : i32
    return %arg0, %c0_i32, %c0_i32_0 : i32, i32, i32
  }
}

</mosaic_0001>

<bundles_post_ra>
// kernel: lposs_forward.2
= control target key start
LH: loop header
LB: loop body
LE: loop exit
PB: predicated region body
PF: predicated region fallthrough
CT: control target
= control target key end

     0   :  { %10 = vsyncpa [#allocation3], 0  ;;  %s880_s0 = inlined_call_operand.vmem [shape: f32[2,16,192], index: 0, kind: input, shape index: {}]   ;;  %s881_s1 = inlined_call_operand.vmem [shape: bf16[192,32], index: 1, kind: input, shape index: {}]   ;;  %s882_s2 = inlined_call_operand.vmem [shape: f32[1,32], index: 2, kind: input, shape index: {}]   ;;  %s883_s3 = inlined_call_operand.vmem [shape: bf16[32,32], index: 3, kind: input, shape index: {}]   ;;  %s884_s4 = inlined_call_operand.vmem [shape: f32[1,32], index: 4, kind: input, shape index: {}]   ;;  %s885_s5 = inlined_call_operand.hbm [shape: f32[2,16,32], index: 5, kind: output, shape index: {}]  }
   0x1   :  { %12 = vsyncpa [#allocation3 + $0x1], 0  ;;  %s742_s18 = smov 0   ;;  %s744_s19 = smov 0  }
   0x2   :  { %s746_s20 = smov 0   ;;  %s748_s21 = smov 0  }
   0x3 LB: > { %s763_s22 = sadd.s32 4294967295, %s708_s21   ;;  %s513_s23 = sadd.s32 4294967294, %s708_s21   ;;  %s708_s21 = sphi %s748_s21, %s891_s21   ;;  %s704_s20 = sphi %s746_s20, %s890_s20   ;;  %s700_s19 = sphi %s744_s19, %s889_s19   ;;  %s696_s18 = sphi %s742_s18, %s888_s18  }
   0x4   : > { %s767_s24 = sadd.s32 1, %s708_s21   ;;  %s135_s25 = sadd.s32 1, %s704_s20 }
   0x5   : > { %s132_s26 = ssub.s32 %s708_s21, %s767_s24  ;;  %p145_p0 = scmp.ne.s32.totalorder %s704_s20, %s700_s19 }
   0x6   : > { %p133_p1 = scmp.eq.s32.totalorder %s132_s26, 0  ;;  %p146_p2 = scmp.eq.s32.totalorder %s763_s22, 1 }
   0x7   : > { %p151_p3 = scmp.ne.s32.totalorder %s700_s19, %s696_s18  ;;  %p152_p4 = scmp.eq.s32.totalorder %s513_s23, 1 }
   0x8   : > { %s778_s27 = scalar_select %p133_p1, %s704_s20, %s135_s25  }
   0x9   : > { %p780_p5 = por %p146_p2, %p145_p0  ;;  %p784_p6 = por %p152_p4, %p151_p3 }
   0xa   : > { %p516_p7 = scmp.ge.s32.totalorder %s708_s21, 1  ;;  %p190_p8 = scmp.lt.s32.totalorder %s708_s21, 3 }
   0xc   : > { %p191_p9 = pnand %p516_p7, %p190_p8 }
   0xd   : > { %p218_p10 = scmp.lt.s32.totalorder (!%p191_p9), %s763_s22, 1  ;;  %s215_s10 = sand.u32 (!%p191_p9), 1, %s700_s19  }
   0xe   : > { %194 = sbr.rel (%p191_p9) target bundleno = 478 (0x1de), region = 40  ;;  %s598_s12 = sshll.u32 (!%p191_p9), %s763_s22, 4 }
   0xf   : > { %s447_s15 = scalar_lea.hbm (!%p191_p9), %s885_s5, %s598_s12  ;;  %s666_s8 = scalar_lea.hbm (!%p191_p9), %s885_s5, 32 }
  0x10   : > { %s450_s23 = sshll.u32 (!%p191_p9), %s447_s15, 4  ;;  %s451_s23 = int_to_ptr.hbm [resolvable:$true] %s450_s23 }
  0x11   : > { %s660_s25 = sshra.s32 (!%p191_p9), %s451_s23, 4  ;;  %s661_s25 = int_to_ptr.hbm [resolvable:$true] %s660_s25 }
  0x12   : > { %s662_s26 = scalar_lea.hbm (!%p191_p9), %s661_s25, 16  ;;  %p667_p0 = scmp.lt.s32.totalorder (!%p191_p9), %s661_s25, %s885_s5 }
  0x13   : > { %v591_v0 = vld [vmem:[%s881_s1 + $0x38] sm:$0xff]  ;;  %v590_v2 = vld [vmem:[%s881_s1 + $0x30] sm:$0xff]  ;;  %s219_s11 = scalar_select %p218_p10, %s763_s22, 1  ;;  %v589_v4 = vld [vmem:[%s881_s1 + $0x28] sm:$0xff]  ;;  %vm330_vm0 = vcmask 523264   ;;  %vm383_vm1 = vcmask 261120  }
  0x14   : > { %v595_v1 = vld [vmem:[%s881_s1 + $0x58] sm:$0xff]  ;;  %334 = vmatpush.bf16.msra.mxu0 %v591_v0  ;;  %v594_v3 = vld [vmem:[%s881_s1 + $0x50] sm:$0xff]  ;;  %v593_v5 = vld [vmem:[%s881_s1 + $0x48] sm:$0xff]  ;;  %s436_s22 = scalar_lea.sflag [#allocation3], %s215_s10  ;;  %p663_p11 = scmp.ne.s32.totalorder %s661_s25, %s662_s26 }
  0x15   : > { %352 = vmatpush.bf16.msra.mxu1 %v595_v1  ;;  %s583_s14 = sshll.u32 %s219_s11, 5  ;;  %v588_v6 = vld [vmem:[%s881_s1 + $0x20] sm:$0xff]  ;;  %v587_v10 = vld [vmem:[%s881_s1 + $0x18] sm:$0xff]  ;;  %v586_v12 = vld [vmem:[%s881_s1 + $0x10] sm:$0xff]  ;;  %s517_s11 = sshll.u32 %s215_s10, 4 }
  0x16   : > { %s222_s30 = scalar_lea.vmem %s880_s0, %s583_s14  ;;  %v592_v7 = vld [vmem:[%s881_s1 + $0x40] sm:$0xff]  ;;  %v585_v13 = vld [vmem:[%s881_s1 + $0x8] sm:$0xff]  ;;  %s217_s16 = scalar_lea.vmem [#allocation2], %s517_s11 }
  0x17   : > { %v225_v8 = vld [vmem:[%s222_s30 + $0x8] sm:$0xff]  ;;  %v227_v9 = vld [vmem:[%s222_s30 + $0x18] sm:$0xff]  ;;  %v584_v14 = vld [vmem:[%s881_s1] sm:$0xff]  ;;  %s448_s17 = sshll.u32 %s217_s16, 4  ;;  %p664_p12 = pnand %p663_p11, %p780_p5  ;;  %s449_s17 = int_to_ptr.vmem [resolvable:$true] %s448_s17 }
  0x18   : > { %335 = vmatpush.bf16.msra.mxu0 %v590_v2  ;;  %v229_v11 = vpack.c.bf16 %v227_v9, %v225_v8  ;;  %v224_v15 = vld [vmem:[%s222_s30] sm:$0xff]  ;;  %v226_v16 = vld [vmem:[%s222_s30 + $0x10] sm:$0xff]  ;;  %v597_v18 = vld [vmem:[%s883_s3 + $0x8] sm:$0xff]  ;;  %p668_p1 = scmp.lt.s32.totalorder %s666_s8, %s662_s26 }
  0x19   : > { %353 = vmatpush.bf16.msra.mxu1 %v594_v3  ;;  %v228_v17 = vpack.c.bf16 %v226_v16, %v224_v15  ;;  %393 = vmatpush.bf16.msra.mxu2 %v597_v18  ;;  %v596_v19 = vld [vmem:[%s883_s3] sm:$0xff]  ;;  %p665_p13 = pneg %p664_p12 }
  0x1a   : > { %v640_v22 = vld [vmem:[%s882_s2] ss:$0 sm:$0xff]  ;;  %p669_p2 = por %p668_p1, %p667_p0 }
  0x1b   : > { %v641_v30 = vld [vmem:[%s884_s4] ss:$0 sm:$0xff] }
  0x1c   : > { %336 = vmatpush.bf16.msra.mxu0 %v589_v4  ;;  %p670_p3 = pnand %p669_p2, %p665_p13 }
  0x1d   : > { %354 = vmatpush.bf16.msra.mxu1 %v593_v5  ;;  %394 = vmatpush.bf16.msra.mxu2 %v596_v19 }
  0x20   : > { %337 = vmatpush.bf16.msra.mxu0 %v588_v6 }
  0x21   : > { %355 = vmatpush.bf16.msra.mxu1 %v592_v7 }
  0x24   : > { %338 = vmatpush.bf16.msra.mxu0 %v587_v10  ;;  %568 = vmatmul.msk.bf16.vlgmr.msra.gmra.mxu1 %vm330_vm0, %v229_v11 }
  0x28   : > { %339 = vmatpush.bf16.msra.mxu0 %v586_v12 }
  0x2c   : > { %340 = vmatpush.bf16.msra.mxu0 %v585_v13 }
  0x30   : > { %341 = vmatpush.bf16.msra.mxu0 %v584_v14 }
  0x33   : > { %342 = vmatmul.bf16.vlgmr.msra.gmra.mxu0 %v228_v17 }
  0xa1   : > { %v357_v20 = vpop.f32.mrf.mxu1 }
  0xa9   : > { %v359_v26 = vpop.f32.mrf.mxu1 }
  0xb0   : > { %v343_v21 = vpop.f32.mrf.mxu0 }
  0xb1   : > { %v344_v23 = vadd.f32 %v640_v22, %v343_v21 }
  0xb3   : > { %v358_v27 = vadd.f32 %v357_v20, %v344_v23 }
  0xb8   : > { %v345_v24 = vpop.f32.mrf.mxu0 }
  0xb9   : > { %v346_v25 = vadd.f32 %v640_v22, %v345_v24 }
  0xbb   : > { %v360_v28 = vadd.f32 %v359_v26, %v346_v25 }
  0xbd   : > { %v362_v29 = vpack.c.bf16 %v360_v28, %v358_v27 }
  0xbf   : > { %577 = vmatmul.msk.bf16.vlgmr.msra.gmra.mxu2 %vm383_vm1, %v362_v29 }
 0x142   : > { %v396_v31 = vpop.f32.mrf.mxu2 }
 0x143   : > { %v397_v32 = vadd.f32 %v641_v30, %v396_v31 }
 0x145   : > { %v401_v33 = vmul.f32 %v397_v32, %v397_v32 }
 0x147   : > { %v403_v34 = vsel %vm383_vm1, %v401_v33, 0.0 }
 0x148   : > { %404 = vadd.xlane.f32.xlu0 %v403_v34 }
 0x14a   : > { %v398_v35 = vpop.f32.mrf.mxu2 }
 0x14b   : > { %v399_v36 = vadd.f32 %v641_v30, %v398_v35 }
 0x14d   : > { %v402_v37 = vmul.f32 %v399_v36, %v399_v36 }
 0x14f   : > { %v406_v38 = vsel %vm383_vm1, %v402_v37, 0.0 }
 0x150   : > { %407 = vadd.xlane.f32.xlu0 %v406_v38 }
 0x1bb   : > { %v405_v39 = vpop.xlane.xlu0 %404 }
 0x1bc   : > { %v409_v40 = vadd.f32 1e-24, %v405_v39 }
 0x1be   : > { %642 = vrsqrt.f32 %v409_v40  ;;  %vm417_vm3 = vweird.f32 %v409_v40 }
 0x1c3   : > { %v408_v41 = vpop.xlane.xlu0 %407 }
 0x1c4   : > { %v643_v42 = vpop.eup %642  ;;  %v410_v43 = vadd.f32 1e-24, %v408_v41 }
 0x1c5   : > { %v412_v44 = vmul.f32 %v643_v42, %v409_v40  ;;  %vm418_vm2 = vweird.f32 %v643_v42 }
 0x1c6   : > { %644 = vrsqrt.f32 %v410_v43  ;;  %vm419_vm4 = vmor %vm417_vm3, %vm418_vm2  ;;  %vm427_vm6 = vweird.f32 %v410_v43 }
 0x1c7   : > { %v413_v45 = vmul.f32 %v643_v42, %v412_v44 }
 0x1c9   : > { %v414_v46 = vmul.f32 0.5, %v413_v45 }
 0x1cb   : > { %v415_v47 = vsub.f32 1.5, %v414_v46 }
 0x1cc   : > { %v645_v48 = vpop.eup %644 }
 0x1cd   : > { %v416_v49 = vmul.f32 %v643_v42, %v415_v47  ;;  %v422_v50 = vmul.f32 %v645_v48, %v410_v43  ;;  %vm428_vm5 = vweird.f32 %v645_v48 }
 0x1ce   : > { %vm429_vm7 = vmor %vm427_vm6, %vm428_vm5 }
 0x1cf   : > { %v420_v51 = vsel %vm419_vm4, %v643_v42, %v416_v49  ;;  %v423_v52 = vmul.f32 %v645_v48, %v422_v50 }
 0x1d0   : > { %v431_v53 = vmul.f32 %v420_v51, %v397_v32 }
 0x1d1   : > { %v424_v54 = vmul.f32 0.5, %v423_v52 }
 0x1d2   : > { %433 = vst.msk [vmem:[%s217_s16] sm:$0xff] %vm383_vm1, %v431_v53 }
 0x1d3   : > { %v425_v55 = vsub.f32 1.5, %v424_v54 }
 0x1d5   : > { %v426_v56 = vmul.f32 %v645_v48, %v425_v55 }
 0x1d7   : > { %v430_v57 = vsel %vm429_vm7, %v645_v48, %v426_v56 }
 0x1d8   : > { %v432_v58 = vmul.f32 %v430_v57, %v399_v36 }
 0x1da   : > { %434 = vst.msk [vmem:[%s217_s16 + $0x8] sm:$0xff] %vm383_vm1, %v432_v58 }
 0x1db   : > { %673 = shalt.err (!%p670_p3)
}
 0x1dc   : > { %s710_s10 = smov 128   ;;  %s711_s11 = smov 8  }
 0x1dd   : > { %599 = dma.vmem_to_hbm [thread:$0]  (%p780_p5), %s449_s17, 256, %s451_s23, %s436_s22, %s710_s10, %s710_s10, %s711_s11  }
 0x1de PF: > { %p605_p4 = scmp.ge.s32.totalorder %s708_s21, 2  ;;  %s465_s12 = sand.u32 1, %s696_s18  }
 0x1df   : > { %s466_s13 = scalar_lea.sflag [#allocation3], %s465_s12 }
 0x1e0   : > { %p602_p7 = pnand %p605_p4, %p784_p6 }
 0x1e2   : > { %p603_p8 = pneg %p602_p7 }
 0x1e4   : > { %691 = dma.done.wait (%p603_p8), %s466_s13, 256  }
 0x1e5   : > { %693 = vsyncadd (%p603_p8), %s466_s13, 4294967040  ;;  %p15_p9 = scmp.ge.s32.totalorder %s767_s24, 4   ;;  %s888_s18 = smov %s700_s19 }
 0x1e6   : > { %s889_s19 = smov %s704_s20  ;;  %s890_s20 = smov %s778_s27 }
 0x1e7   : > { %s891_s21 = smov %s767_s24  ;;  %17 = sbr.rel (!%p15_p9) target bundleno = 3 (0x3), region = 75 }
 0x1ec   :  { %472 = vsyncpa [#allocation3], 1 }
 0x1ed   :  { %474 = vsyncpa [#allocation3 + $0x1], 1 }

// kernel: lposs_forward.3
= control target key start
LH: loop header
LB: loop body
LE: loop exit
PB: predicated region body
PF: predicated region fallthrough
CT: control target
= control target key end

     0   :  { %8 = vsyncpa [#allocation3], 0  ;;  %s1368_s0 = inlined_call_operand.vmem [shape: f32[2,4,768], index: 0, kind: input, shape index: {}]   ;;  %s1369_s1 = inlined_call_operand.vmem [shape: bf16[768,32], index: 1, kind: input, shape index: {}]   ;;  %s1370_s2 = inlined_call_operand.vmem [shape: f32[1,32], index: 2, kind: input, shape index: {}]   ;;  %s1371_s3 = inlined_call_operand.hbm [shape: f32[2,4,32], index: 3, kind: output, shape index: {}]  }
   0x1   :  { %10 = vsyncpa [#allocation3 + $0x1], 0  ;;  %s1134_s12 = smov 0   ;;  %s1136_s13 = smov 0  }
   0x2   :  { %s1138_s14 = smov 0   ;;  %s1140_s15 = smov 0  }
   0x3 LB: > { %s1155_s16 = sadd.s32 4294967295, %s1112_s15   ;;  %s757_s17 = sadd.s32 4294967294, %s1112_s15   ;;  %s1112_s15 = sphi %s1140_s15, %s1377_s15   ;;  %s1108_s14 = sphi %s1138_s14, %s1376_s14   ;;  %s1104_s13 = sphi %s1136_s13, %s1375_s13   ;;  %s1100_s12 = sphi %s1134_s12, %s1374_s12  }
   0x4   : > { %s1159_s18 = sadd.s32 1, %s1112_s15   ;;  %s91_s19 = sadd.s32 1, %s1108_s14 }
   0x5   : > { %s88_s20 = ssub.s32 %s1112_s15, %s1159_s18  ;;  %p101_p0 = scmp.ne.s32.totalorder %s1108_s14, %s1104_s13 }
   0x6   : > { %p89_p1 = scmp.eq.s32.totalorder %s88_s20, 0  ;;  %p102_p2 = scmp.eq.s32.totalorder %s1155_s16, 1 }
   0x7   : > { %p107_p3 = scmp.ne.s32.totalorder %s1104_s13, %s1100_s12  ;;  %p108_p4 = scmp.eq.s32.totalorder %s757_s17, 1 }
   0x8   : > { %s1170_s21 = scalar_select %p89_p1, %s1108_s14, %s91_s19  }
   0x9   : > { %p1172_p5 = por %p102_p2, %p101_p0  ;;  %p1176_p6 = por %p108_p4, %p107_p3 }
   0xa   : > { %p760_p7 = scmp.ge.s32.totalorder %s1112_s15, 1  ;;  %p140_p8 = scmp.lt.s32.totalorder %s1112_s15, 3 }
   0xc   : > { %p141_p9 = pnand %p760_p7, %p140_p8 }
   0xd   : > { %p164_p10 = scmp.lt.s32.totalorder (!%p141_p9), %s1155_s16, 1  ;;  %s161_s11 = sand.u32 (!%p141_p9), 1, %s1104_s13  }
   0xe   : > { %144 = sbr.rel (%p141_p9) target bundleno = 357 (0x165), region = 32  ;;  %s761_s19 = sshll.u32 (!%p141_p9), %s161_s11, 2 }
   0xf   : > { %s956_s20 = sshll.u32 (!%p141_p9), %s1155_s16, 2  ;;  %s163_s26 = scalar_lea.vmem (!%p141_p9), [#allocation2], %s761_s19 }
  0x10   : > { %s693_s25 = scalar_lea.hbm (!%p141_p9), %s1371_s3, %s956_s20  ;;  %s695_s27 = sshll.u32 (!%p141_p9), %s163_s26, 4  ;;  %s696_s27 = int_to_ptr.vmem [resolvable:$true] %s695_s27 }
  0x11   : > { %s697_s28 = sshll.u32 (!%p141_p9), %s693_s25, 4  ;;  %s1070_s6 = scalar_lea.hbm (!%p141_p9), %s1371_s3, 8  ;;  %s698_s28 = int_to_ptr.hbm [resolvable:$true] %s697_s28 }
  0x12   : > { %s1064_s29 = sshra.s32 (!%p141_p9), %s698_s28, 4  ;;  %s1065_s29 = int_to_ptr.hbm [resolvable:$true] %s1064_s29 }
  0x13   : > { %v966_v0 = vld [vmem:[%s1369_s1 + $0x38] sm:$0xff]  ;;  %v965_v2 = vld [vmem:[%s1369_s1 + $0x30] sm:$0xff]  ;;  %s165_s7 = scalar_select %p164_p10, %s1155_s16, 1  ;;  %v964_v8 = vld [vmem:[%s1369_s1 + $0x28] sm:$0xff]  ;;  %vm665_vm0 = vcmask 257024  }
  0x14   : > { %v974_v1 = vld [vmem:[%s1369_s1 + $0x78] sm:$0xff]  ;;  %586 = vmatpush.bf16.msra.mxu0 %v966_v0  ;;  %v973_v3 = vld [vmem:[%s1369_s1 + $0x70] sm:$0xff]  ;;  %v972_v9 = vld [vmem:[%s1369_s1 + $0x68] sm:$0xff]  ;;  %s683_s16 = scalar_lea.sflag [#allocation3], %s161_s11  ;;  %p1071_p0 = scmp.lt.s32.totalorder %s1065_s29, %s1371_s3 }
  0x15   : > { %599 = vmatpush.bf16.msra.mxu1 %v974_v1  ;;  %v982_v4 = vld [vmem:[%s1369_s1 + $0xb8] sm:$0xff]  ;;  %v981_v6 = vld [vmem:[%s1369_s1 + $0xb0] sm:$0xff]  ;;  %s1007_s17 = smul.u32 24, %s165_s7  ;;  %v980_v10 = vld [vmem:[%s1369_s1 + $0xa8] sm:$0xff] }
  0x16   : > { %v990_v5 = vld [vmem:[%s1369_s1 + $0xf8] sm:$0xff]  ;;  %612 = vmatpush.bf16.msra.mxu2 %v982_v4  ;;  %v989_v7 = vld [vmem:[%s1369_s1 + $0xf0] sm:$0xff]  ;;  %v988_v11 = vld [vmem:[%s1369_s1 + $0xe8] sm:$0xff] }
  0x17   : > { %625 = vmatpush.bf16.msra.mxu3 %v990_v5  ;;  %s168_s5 = scalar_lea.vmem %s1368_s0, %s1007_s17  ;;  %v963_v12 = vld [vmem:[%s1369_s1 + $0x20] sm:$0xff]  ;;  %v962_v18 = vld [vmem:[%s1369_s1 + $0x18] sm:$0xff]  ;;  %v961_v22 = vld [vmem:[%s1369_s1 + $0x10] sm:$0xff] }
  0x18   : > { %587 = vmatpush.bf16.msra.mxu0 %v965_v2  ;;  %v971_v13 = vld [vmem:[%s1369_s1 + $0x60] sm:$0xff]  ;;  %v170_v17 = vld [vmem:[%s168_s5 + $0x8] sm:$0xff]  ;;  %v970_v19 = vld [vmem:[%s1369_s1 + $0x58] sm:$0xff] }
  0x19   : > { %600 = vmatpush.bf16.msra.mxu1 %v973_v3  ;;  %v169_v14 = vld [vmem:[%s168_s5] sm:$0xff]  ;;  %177 = vst [vmem:[#allocation1 + $0x10] ss:$2 sm:$0xff] %v170_v17  ;;  %v978_v20 = vld [vmem:[%s1369_s1 + $0x98] sm:$0xff]  ;;  %v969_v23 = vld [vmem:[%s1369_s1 + $0x50] sm:$0xff] }
  0x1a   : > { %613 = vmatpush.bf16.msra.mxu2 %v981_v6  ;;  %v979_v15 = vld [vmem:[%s1369_s1 + $0xa0] sm:$0xff]  ;;  %175 = vst [vmem:[#allocation1] ss:$2 sm:$0xff] %v169_v14  ;;  %v986_v21 = vld [vmem:[%s1369_s1 + $0xd8] sm:$0xff]  ;;  %v977_v24 = vld [vmem:[%s1369_s1 + $0x90] sm:$0xff] }
  0x1b   : > { %626 = vmatpush.bf16.msra.mxu3 %v989_v7  ;;  %v987_v16 = vld [vmem:[%s1369_s1 + $0xe0] sm:$0xff]  ;;  %v171_v25 = vld [vmem:[%s168_s5 + $0x10] sm:$0xff]  ;;  %v960_v27 = vld [vmem:[%s1369_s1 + $0x8] sm:$0xff]  ;;  %s1066_s5 = scalar_lea.hbm %s1065_s29, 4 }
  0x1c   : > { %588 = vmatpush.bf16.msra.mxu0 %v964_v8  ;;  %v985_v26 = vld [vmem:[%s1369_s1 + $0xd0] sm:$0xff]  ;;  %v968_v28 = vld [vmem:[%s1369_s1 + $0x48] sm:$0xff]  ;;  %179 = vst [vmem:[#allocation1 + $0x20] ss:$2 sm:$0xff] %v171_v25  ;;  %v959_v30 = vld [vmem:[%s1369_s1] sm:$0xff]  ;;  %p1067_p11 = scmp.ne.s32.totalorder %s1065_s29, %s1066_s5  ;;  %p1072_p1 = scmp.lt.s32.totalorder %s1070_s6, %s1066_s5 }
  0x1d   : > { %601 = vmatpush.bf16.msra.mxu1 %v972_v9  ;;  %v976_v29 = vld [vmem:[%s1369_s1 + $0x88] sm:$0xff]  ;;  %v967_v31 = vld [vmem:[%s1369_s1 + $0x40] sm:$0xff]  ;;  %v998_v35 = vld [vmem:[%s1369_s1 + $0x138] sm:$0xff] }
  0x1e   : > { %614 = vmatpush.bf16.msra.mxu2 %v980_v10  ;;  %v984_v32 = vld [vmem:[%s1369_s1 + $0xc8] sm:$0xff]  ;;  %v1006_v36 = vld [vmem:[%s1369_s1 + $0x178] sm:$0xff]  ;;  %v975_v37 = vld [vmem:[%s1369_s1 + $0x80] sm:$0xff]  ;;  %p1068_p12 = pnand %p1067_p11, %p1172_p5  ;;  %p1073_p2 = por %p1072_p1, %p1071_p0 }
  0x1f   : > { %627 = vmatpush.bf16.msra.mxu3 %v988_v11  ;;  %v983_v41 = vld [vmem:[%s1369_s1 + $0xc0] sm:$0xff]  ;;  %v997_v43 = vld [vmem:[%s1369_s1 + $0x130] sm:$0xff]  ;;  %v996_v47 = vld [vmem:[%s1369_s1 + $0x128] sm:$0xff] }
  0x20   : > { %589 = vmatpush.bf16.msra.mxu0 %v963_v12  ;;  %v182_v40 = vld.sshfl [vmem:[#allocation1 + $0x10] sm:$0xff pattern:$0x75316420]  ;;  %v183_v42 = vld.sshfl [vmem:[#allocation1 + $0x18] sm:$0xff pattern:$0x75316420]  ;;  %p1069_p13 = pneg %p1068_p12 }
  0x21   : > { %602 = vmatpush.bf16.msra.mxu1 %v971_v13  ;;  %v180_v33 = vld.sshfl [vmem:[#allocation1] sm:$0xff pattern:$0x75316420]  ;;  %v181_v34 = vld.sshfl [vmem:[#allocation1 + $0x8] sm:$0xff pattern:$0x75316420]  ;;  %v194_v45 = vpack.c.bf16 %v182_v40, %v182_v40  ;;  %v195_v46 = vpack.c.bf16 %v183_v42, %v183_v42 }
  0x22   : > { %615 = vmatpush.bf16.msra.mxu2 %v979_v15  ;;  %v192_v38 = vpack.c.bf16 %v180_v33, %v180_v33  ;;  %v193_v39 = vpack.c.bf16 %v181_v34, %v181_v34  ;;  %v1005_v44 = vld [vmem:[%s1369_s1 + $0x170] sm:$0xff]  ;;  %v1004_v48 = vld [vmem:[%s1369_s1 + $0x168] sm:$0xff]  ;;  %v995_v49 = vld [vmem:[%s1369_s1 + $0x120] sm:$0xff]  ;;  %p1074_p3 = pnand %p1073_p2, %p1069_p13 }
  0x23   : > { %628 = vmatpush.bf16.msra.mxu3 %v987_v16  ;;  %v1003_v50 = vld [vmem:[%s1369_s1 + $0x160] sm:$0xff]  ;;  %v994_v51 = vld [vmem:[%s1369_s1 + $0x118] sm:$0xff]  ;;  %v993_v53 = vld [vmem:[%s1369_s1 + $0x110] sm:$0xff] }
  0x24   : > { %590 = vmatpush.bf16.msra.mxu0 %v962_v18  ;;  %v1002_v52 = vld [vmem:[%s1369_s1 + $0x158] sm:$0xff]  ;;  %v1001_v54 = vld [vmem:[%s1369_s1 + $0x150] sm:$0xff]  ;;  %v992_v55 = vld [vmem:[%s1369_s1 + $0x108] sm:$0xff] }
  0x25   : > { %603 = vmatpush.bf16.msra.mxu1 %v970_v19  ;;  %v1000_v56 = vld [vmem:[%s1369_s1 + $0x148] sm:$0xff]  ;;  %v991_v57 = vld [vmem:[%s1369_s1 + $0x100] sm:$0xff] }
  0x26   : > { %616 = vmatpush.bf16.msra.mxu2 %v978_v20  ;;  %v999_v58 = vld [vmem:[%s1369_s1 + $0x140] sm:$0xff]  ;;  %v185_v60 = vld.sshfl [vmem:[#allocation1 + $0x28] sm:$0xff pattern:$0x75316420] }
  0x27   : > { %629 = vmatpush.bf16.msra.mxu3 %v986_v21  ;;  %v184_v59 = vld.sshfl [vmem:[#allocation1 + $0x20] sm:$0xff pattern:$0x75316420]  ;;  %v197_v62 = vpack.c.bf16 %v185_v60, %v185_v60 }
  0x28   : > { %591 = vmatpush.bf16.msra.mxu0 %v961_v22  ;;  %v196_v61 = vpack.c.bf16 %v184_v59, %v184_v59  ;;  %v1047_v5 = vld [vmem:[%s1370_s2] ss:$0 sm:$0xff] }
  0x29   : > { %604 = vmatpush.bf16.msra.mxu1 %v969_v23 }
  0x2a   : > { %617 = vmatpush.bf16.msra.mxu2 %v977_v24 }
  0x2b   : > { %630 = vmatpush.bf16.msra.mxu3 %v985_v26 }
  0x2c   : > { %592 = vmatpush.bf16.msra.mxu0 %v960_v27 }
  0x2d   : > { %605 = vmatpush.bf16.msra.mxu1 %v968_v28 }
  0x2e   : > { %618 = vmatpush.bf16.msra.mxu2 %v976_v29 }
  0x2f   : > { %631 = vmatpush.bf16.msra.mxu3 %v984_v32 }
  0x30   : > { %593 = vmatpush.bf16.msra.mxu0 %v959_v30 }
  0x31   : > { %606 = vmatpush.bf16.msra.mxu1 %v967_v31 }
  0x32   : > { %619 = vmatpush.bf16.msra.mxu2 %v975_v37 }
  0x33   : > { %594 = vmatmul.bf16.vlgmr.msra.gmra.mxu0 %v192_v38  ;;  %632 = vmatpush.bf16.msra.mxu3 %v983_v41 }
  0x34   : > { %638 = vmatpush.bf16.msrb.mxu0 %v998_v35  ;;  %607 = vmatmul.bf16.vlgmr.msra.gmra.mxu1 %v193_v39 }
  0x35   : > { %651 = vmatpush.bf16.msrb.mxu1 %v1006_v36  ;;  %620 = vmatmul.bf16.vlgmr.msra.gmra.mxu2 %v194_v45 }
  0x36   : > { %633 = vmatmul.bf16.vlgmr.msra.gmra.mxu3 %v195_v46 }
  0x38   : > { %639 = vmatpush.bf16.msrb.mxu0 %v997_v43 }
  0x39   : > { %652 = vmatpush.bf16.msrb.mxu1 %v1005_v44 }
  0x3c   : > { %640 = vmatpush.bf16.msrb.mxu0 %v996_v47 }
  0x3d   : > { %653 = vmatpush.bf16.msrb.mxu1 %v1004_v48 }
  0x40   : > { %641 = vmatpush.bf16.msrb.mxu0 %v995_v49 }
  0x41   : > { %654 = vmatpush.bf16.msrb.mxu1 %v1003_v50 }
  0x44   : > { %642 = vmatpush.bf16.msrb.mxu0 %v994_v51 }
  0x45   : > { %655 = vmatpush.bf16.msrb.mxu1 %v1002_v52 }
  0x48   : > { %643 = vmatpush.bf16.msrb.mxu0 %v993_v53 }
  0x49   : > { %656 = vmatpush.bf16.msrb.mxu1 %v1001_v54 }
  0x4c   : > { %644 = vmatpush.bf16.msrb.mxu0 %v992_v55 }
  0x4d   : > { %657 = vmatpush.bf16.msrb.mxu1 %v1000_v56 }
  0x50   : > { %645 = vmatpush.bf16.msrb.mxu0 %v991_v57 }
  0x51   : > { %658 = vmatpush.bf16.msrb.mxu1 %v999_v58 }
  0x53   : > { %646 = vmatmul.bf16.vlgmr.msrb.gmra.mxu0 %v196_v61 }
  0x54   : > { %659 = vmatmul.bf16.vlgmr.msrb.gmra.mxu1 %v197_v62 }
  0xb0   : > { %v595_v63 = vpop.f32.mrf.mxu0 }
  0xb1   : > { %v608_v0 = vpop.f32.mrf.mxu1  ;;  %v596_v6 = vadd.f32 %v1047_v5, %v595_v63 }
  0xb3   : > { %v609_v9 = vadd.f32 %v608_v0, %v596_v6 }
  0xb8   : > { %v597_v1 = vpop.f32.mrf.mxu0  ;;  %v621_v3 = vpop.f32.mrf.mxu2 }
  0xb9   : > { %v610_v2 = vpop.f32.mrf.mxu1  ;;  %v634_v4 = vpop.f32.mrf.mxu3  ;;  %v622_v10 = vadd.f32 %v621_v3, %v609_v9 }
  0xbb   : > { %v635_v11 = vadd.f32 %v634_v4, %v622_v10 }
  0xc0   : > { %v623_v7 = vpop.f32.mrf.mxu2 }
  0xc1   : > { %v636_v8 = vpop.f32.mrf.mxu3 }
  0xd0   : > { %v647_v12 = vpop.f32.mrf.mxu0 }
  0xd1   : > { %v660_v13 = vpop.f32.mrf.mxu1  ;;  %v648_v14 = vadd.f32 %v647_v12, %v635_v11 }
  0xd3   : > { %v661_v15 = vadd.f32 %v660_v13, %v648_v14 }
  0xd5   : > { %v664_v16 = vmul.f32 %v661_v15, %v661_v15 }
  0xd7   : > { %v666_v17 = vsel %vm665_vm0, %v664_v16, 0.0 }
  0xd8   : > { %v649_v18 = vpop.f32.mrf.mxu0  ;;  %667 = vadd.xlane.f32.xlu0 %v666_v17 }
  0xd9   : > { %v662_v19 = vpop.f32.mrf.mxu1 }
 0x14b   : > { %v668_v20 = vpop.xlane.xlu0 %667 }
 0x14c   : > { %v669_v21 = vadd.f32 1e-24, %v668_v20 }
 0x14e   : > { %1048 = vrsqrt.f32 %v669_v21  ;;  %vm676_vm2 = vweird.f32 %v669_v21 }
 0x154   : > { %v1049_v22 = vpop.eup %1048 }
 0x155   : > { %v671_v23 = vmul.f32 %v1049_v22, %v669_v21  ;;  %vm677_vm1 = vweird.f32 %v1049_v22 }
 0x156   : > { %vm678_vm3 = vmor %vm676_vm2, %vm677_vm1 }
 0x157   : > { %v672_v24 = vmul.f32 %v1049_v22, %v671_v23 }
 0x159   : > { %v673_v25 = vmul.f32 0.5, %v672_v24 }
 0x15b   : > { %v674_v26 = vsub.f32 1.5, %v673_v25 }
 0x15d   : > { %v675_v27 = vmul.f32 %v1049_v22, %v674_v26 }
 0x15f   : > { %v679_v28 = vsel %vm678_vm3, %v1049_v22, %v675_v27 }
 0x160   : > { %v680_v29 = vmul.f32 %v679_v28, %v661_v15 }
 0x162   : > { %681 = vst.msk [vmem:[%s163_s26] sm:$0xf] %vm665_vm0, %v680_v29 }
 0x163   : > { %1077 = shalt.err (!%p1074_p3)
}
 0x164   : > { %1008 = dma.vmem_to_hbm [thread:$0]  (%p1172_p5), %s696_s27, 64, %s698_s28, %s683_s16  }
 0x165 PF: > { %p1014_p4 = scmp.ge.s32.totalorder %s1112_s15, 2  ;;  %s709_s9 = sand.u32 1, %s1100_s12  }
 0x166   : > { %s710_s10 = scalar_lea.sflag [#allocation3], %s709_s9 }
 0x167   : > { %p1011_p7 = pnand %p1014_p4, %p1176_p6 }
 0x169   : > { %p1012_p8 = pneg %p1011_p7 }
 0x16b   : > { %1095 = dma.done.wait (%p1012_p8), %s710_s10, 64  }
 0x16c   : > { %1097 = vsyncadd (%p1012_p8), %s710_s10, 4294967232  ;;  %p13_p9 = scmp.ge.s32.totalorder %s1159_s18, 4   ;;  %s1374_s12 = smov %s1104_s13 }
 0x16d   : > { %s1375_s13 = smov %s1108_s14  ;;  %s1376_s14 = smov %s1170_s21 }
 0x16e   : > { %s1377_s15 = smov %s1159_s18  ;;  %15 = sbr.rel (!%p13_p9) target bundleno = 3 (0x3), region = 69 }
 0x173   :  { %716 = vsyncpa [#allocation3], 1 }
 0x174   :  { %718 = vsyncpa [#allocation3 + $0x1], 1 }

</bundles_post_ra>
